<compile_context>
chip_gen: v7x
topology: tpu7x:2x2x1
jax: 0.10.0
libtpu: 0.0.40
codegen_flags: <defaults>
</compile_context>

<pallas_src>
import jax
import jax.numpy as jnp
from jax.experimental import pallas as pl
from jax.experimental.pallas import tpu as pltpu


def _round_up(x, m):
    return ((x + m - 1) // m) * m


def _context_learn_kernel(ctx_ref, rhs_ref, b_ref, out_ref):
    # Single MXU pass per tile: (tn/F, F*K) @ (F*K, F*H), f32 accumulation,
    # bias added in f32, lane-dense (128-wide) output store.
    acc = jnp.dot(ctx_ref[...], rhs_ref[...],
                  preferred_element_type=jnp.float32)
    out_ref[...] = (acc + b_ref[...]).astype(out_ref.dtype)


def context_learn_forward(contexts, embeddings, linear_w, linear_b,
                          *, tn=512, compute_dtype=jnp.bfloat16):
    """Forward pass of ContextLearn.

    contexts:   list of arrays (N, K_i), row-normalized
    embeddings: list of arrays (K_i, H)
    linear_w:   (H, 5*H)  -- PyTorch Linear layout (out_features, in_features)
    linear_b:   (H,)
    returns:    (N, H) float32
    """
    N = contexts[0].shape[0]
    H = embeddings[0].shape[1]
    n_groups = len(contexts)

    # ---- fold the Linear weight into the embeddings (done once, tiny) ------
    # W_i = W[:, i*H:(i+1)*H].T  (shape (H, H)); emb_fold_i = emb_i @ W_i.
    w_blocks = [linear_w[:, i * H:(i + 1) * H].T for i in range(n_groups)]
    emb_fold = jnp.concatenate(
        [e.astype(jnp.float32) @ w.astype(jnp.float32)
         for e, w in zip(embeddings, w_blocks)], axis=0)        # (K_total, H)
    ctx_cat = jnp.concatenate(contexts, axis=1)                  # (N, K_total)
    K_total = ctx_cat.shape[1]

    # ---- pad the contraction dim for sublane alignment (zeros -> no effect)
    K_pad = _round_up(K_total, 8)
    if K_pad != K_total:
        ctx_cat = jnp.pad(ctx_cat, ((0, 0), (0, K_pad - K_total)))
        emb_fold = jnp.pad(emb_fold, ((0, K_pad - K_total), (0, 0)))

    # ---- lane-dense folding factor: pack F output rows into 128 lanes ------
    F = 128 // H if (H < 128 and 128 % H == 0) else 1

    # ---- tile sizing (rows of the original (N, H) output per grid step) ----
    tn = max(tn, F * 8)
    tn = _round_up(tn, F * 8)           # tn/F must be a multiple of 8
    n_pad_min = _round_up(N, F * 8)
    if tn > n_pad_min:                  # don't over-tile tiny inputs
        tn = n_pad_min
    N_pad = _round_up(N, tn)
    if N_pad != N:
        ctx_cat = jnp.pad(ctx_cat, ((0, N_pad - N), (0, 0)))

    # ---- build the wide (lane-dense) operands ------------------------------
    # ctx_wide row r = ctx rows F*r .. F*r+F-1 concatenated along K
    # (a pure row-major reshape, done in plain JAX outside the kernel).
    ctx_wide = ctx_cat.reshape(N_pad // F, F * K_pad).astype(compute_dtype)
    # rhs_wide = block_diag(emb_fold, ..., emb_fold)  (F copies).
    rhs_wide = jnp.zeros((F * K_pad, F * H), jnp.float32)
    for j in range(F):
        rhs_wide = rhs_wide.at[j * K_pad:(j + 1) * K_pad,
                               j * H:(j + 1) * H].set(emb_fold)
    rhs_wide = rhs_wide.astype(compute_dtype)
    bias_wide = jnp.tile(linear_b.astype(jnp.float32), F).reshape(1, F * H)

    grid = (N_pad // tn,)
    out_wide = pl.pallas_call(
        _context_learn_kernel,
        out_shape=jax.ShapeDtypeStruct((N_pad // F, F * H), jnp.float32),
        grid=grid,
        in_specs=[
            # streamed context tile, lane-dense (last dim F*K_pad >= 128):
            pl.BlockSpec((tn // F, F * K_pad), lambda i: (i, 0)),
            # folded block-diagonal embedding: VMEM-resident across the grid
            pl.BlockSpec((F * K_pad, F * H), lambda i: (0, 0)),
            # bias (tiled F times): VMEM-resident across the grid
            pl.BlockSpec((1, F * H), lambda i: (0, 0)),
        ],
        out_specs=pl.BlockSpec((tn // F, F * H), lambda i: (i, 0)),
        compiler_params=pltpu.CompilerParams(
            dimension_semantics=("parallel",)),
    )(ctx_wide, rhs_wide, bias_wide)

    # Undo the lane packing (row-major view) and strip row padding.
    return out_wide.reshape(N_pad, H)[:N]


def _normalize(x):
    # matches normalize(): row-wise divide by the row sum
    return x / jnp.sum(x, axis=1, keepdims=True)


def _reference(contexts, embeddings, linear_w, linear_b):
    spots = [c @ e for c, e in zip(contexts, embeddings)]
    cat = jnp.concatenate(spots, axis=1)
    return cat @ linear_w.T + linear_b


if __name__ == "__main__":
    key = jax.random.PRNGKey(0)
    H = 32                       # hidden_channels
    N = 16                       # number of spots (rows of the context mats)
    K_sizes = [5, 12, 5, 5, 4]   # people, season, sex, age, time

    keys = jax.random.split(key, 12)

    # Synthetic (deterministic) context matrices, row-normalized like normalize().
    contexts = []
    for i, k in enumerate(K_sizes):
        raw = jax.random.uniform(keys[i], (N, k), dtype=jnp.float32,
                                 minval=0.1, maxval=1.0)
        contexts.append(_normalize(raw))

    # Embedding weights: normal(std=0.1), shapes (num_embeddings, H).
    embeddings = [0.1 * jax.random.normal(keys[5 + i], (k, H), dtype=jnp.float32)
                  for i, k in enumerate(K_sizes)]

    # Linear(5H -> H): PyTorch default init U(-1/sqrt(fan_in), 1/sqrt(fan_in)).
    fan_in = 5 * H
    bound = 1.0 / (fan_in ** 0.5)
    linear_w = jax.random.uniform(keys[10], (H, 5 * H), dtype=jnp.float32,
                                  minval=-bound, maxval=bound)
    linear_b = jax.random.uniform(keys[11], (H,), dtype=jnp.float32,
                                  minval=-bound, maxval=bound)

    ref = _reference(contexts, embeddings, linear_w, linear_b)

    # 1) full-precision path: must match the reference tightly.
    out_f32 = context_learn_forward(contexts, embeddings, linear_w, linear_b,
                                    compute_dtype=jnp.float32)
    out_f32 = jax.block_until_ready(out_f32)
    assert out_f32.shape == (N, H), out_f32.shape
    assert jnp.allclose(out_f32, ref, atol=1e-5, rtol=1e-5), "f32 mismatch"

    # 2) fast path (bf16 operands, f32 accumulation): looser tolerance.
    out_bf16 = context_learn_forward(contexts, embeddings, linear_w, linear_b)
    out_bf16 = jax.block_until_ready(out_bf16)
    assert out_bf16.shape == (N, H), out_bf16.shape
    assert jnp.allclose(out_bf16, ref, atol=5e-3, rtol=5e-3), "bf16 mismatch"

    # 3) larger N: exercises multi-step grid (grid=4) and row padding.
    N2 = 1000
    keys2 = jax.random.split(jax.random.PRNGKey(1), 5)
    contexts2 = [_normalize(jax.random.uniform(keys2[i], (N2, k),
                                               dtype=jnp.float32,
                                               minval=0.1, maxval=1.0))
                 for i, k in enumerate(K_sizes)]
    ref2 = _reference(contexts2, embeddings, linear_w, linear_b)
    out2 = context_learn_forward(contexts2, embeddings, linear_w, linear_b,
                                 tn=256)
    out2 = jax.block_until_ready(out2)
    assert out2.shape == (N2, H), out2.shape
    assert jnp.allclose(out2, ref2, atol=5e-3, rtol=5e-3), "tiled mismatch"

    print("KERNEL_OK")
</pallas_src>

<mosaic_0001>
module attributes {stable_mosaic.version = 11 : i64} {
  func.func @_context_learn_kernel(%arg0: i32, %arg1: memref<8x128xf32, #tpu.memory_space<vmem>>, %arg2: memref<128x128xf32, #tpu.memory_space<vmem>>, %arg3: memref<1x128xf32, #tpu.memory_space<vmem>>, %arg4: memref<8x128xf32, #tpu.memory_space<vmem>>) attributes {dimension_semantics = [#tpu.dimension_semantics<parallel>], iteration_bounds = array<i64: 1>, scalar_prefetch = 0 : i64, scratch_operands = 0 : i64, tpu.core_type = #tpu.core_type<tc>, window_params = [{transform_indices = @transform_0, window_bounds = array<i64: 8, 128>}, {pipeline_mode = #tpu.pipeline_mode<synchronous>, transform_indices = @transform_1, window_bounds = array<i64: 128, 128>}, {pipeline_mode = #tpu.pipeline_mode<synchronous>, transform_indices = @transform_2, window_bounds = array<i64: 1, 128>}, {transform_indices = @transform_3, window_bounds = array<i64: 8, 128>}]} {
    %c0 = arith.constant 0 : index
    %c0_0 = arith.constant 0 : index
    %0 = vector.load %arg1[%c0, %c0_0] : memref<8x128xf32, #tpu.memory_space<vmem>>, vector<8x128xf32>
    %c0_1 = arith.constant 0 : index
    %c0_2 = arith.constant 0 : index
    %1 = vector.load %arg2[%c0_1, %c0_2] : memref<128x128xf32, #tpu.memory_space<vmem>>, vector<128x128xf32>
    %cst = arith.constant dense<0.000000e+00> : vector<8x128xf32>
    %2 = tpu.matmul %0, %1, %cst {dimension_numbers = #tpu.dot_dimension_numbers<[1], [0], [0], [1], [0, 0, 1, 1], [], []>} : vector<8x128xf32>, vector<128x128xf32>, vector<8x128xf32> -> vector<8x128xf32>
    %c0_3 = arith.constant 0 : index
    %c0_4 = arith.constant 0 : index
    %3 = vector.load %arg3[%c0_3, %c0_4] : memref<1x128xf32, #tpu.memory_space<vmem>>, vector<1x128xf32>
    %4 = vector.broadcast %3 : vector<1x128xf32> to vector<8x128xf32>
    %5 = arith.addf %2, %4 : vector<8x128xf32>
    %c0_5 = arith.constant 0 : index
    %c0_6 = arith.constant 0 : index
    %6 = vector.load %arg4[%c0_5, %c0_6] : memref<8x128xf32, #tpu.memory_space<vmem>>, vector<8x128xf32>
    tpu.vector_store %arg4[%c0_5, %c0_6], %5 {strides = array<i32>} : memref<8x128xf32, #tpu.memory_space<vmem>>, vector<8x128xf32>,
    return
  }
  func.func @transform_0(%arg0: i32) -> (i32, i32) {
    %c0_i32 = arith.constant 0 : i32
    %c0_i32_0 = arith.constant 0 : i32
    return %arg0, %c0_i32 : i32, i32
  }
  func.func @transform_1(%arg0: i32) -> (i32, i32) {
    %c0_i32 = arith.constant 0 : i32
    %c0_i32_0 = arith.constant 0 : i32
    %c0_i32_1 = arith.constant 0 : i32
    return %c0_i32, %c0_i32_0 : i32, i32
  }
  func.func @transform_2(%arg0: i32) -> (i32, i32) {
    %c0_i32 = arith.constant 0 : i32
    %c0_i32_0 = arith.constant 0 : i32
    %c0_i32_1 = arith.constant 0 : i32
    return %c0_i32, %c0_i32_0 : i32, i32
  }
  func.func @transform_3(%arg0: i32) -> (i32, i32) {
    %c0_i32 = arith.constant 0 : i32
    %c0_i32_0 = arith.constant 0 : i32
    return %arg0, %c0_i32 : i32, i32
  }
}

</mosaic_0001>

<bundles_post_ra>
// kernel: tpu_custom_call.1
= control target key start
LH: loop header
LB: loop body
LE: loop exit
PB: predicated region body
PF: predicated region fallthrough
CT: control target
= control target key end

     0   :  { %8 = vsyncpa [#allocation3], 0  ;;  %s383_s0 = inlined_call_operand.hbm [shape: f32[8,128], index: 0, kind: input, shape index: {}]   ;;  %s384_s1 = inlined_call_operand.hbm [shape: f32[128,128], index: 1, kind: input, shape index: {}]   ;;  %s385_s2 = inlined_call_operand.vmem [shape: f32[1,128], index: 2, kind: input, shape index: {}]   ;;  %s386_s3 = inlined_call_operand.hbm [shape: f32[8,128], index: 3, kind: output, shape index: {}]  }
   0x1   :  { %9 = vsyncpa [#allocation6], 0 }
   0x2   :  { %10 = vsyncpa [#allocation4], 0  ;;  %s309_s12 = smov [#allocation2]   ;;  %s310_s14 = smov [#allocation5]  }
   0x3   :  { %s17_s13 = sshll.u32 %s309_s12, 4  ;;  %s26_s15 = sshll.u32 %s310_s14, 4  ;;  %s18_s13 = int_to_ptr.vmem [resolvable:$true] %s17_s13  ;;  %s337_s15 = int_to_ptr.vmem [resolvable:$true] %s26_s15 }
   0x4   :  { %s237_s18 = scalar_lea.hbm %s383_s0, 128 }
   0x5   :  { %p238_p0 = scmp.ne.s32.totalorder %s383_s0, %s237_s18  ;;  %p241_p1 = scmp.lt.u32.totalorder %s237_s18, %s383_s0 }
   0x7   :  { %p243_p2 = pnand %p241_p1, %p238_p0 }
   0x9   :  { %246 = shalt.err (!%p243_p2)
}
   0xa   :  { %s247_s23 = scalar_lea.vmem %s18_s13, 128  ;;  %p252_p4 = scmp.lt.s32.totalorder %s18_s13, %s18_s13 }
   0xb   :  { %p248_p3 = scmp.ne.s32.totalorder %s18_s13, %s247_s23  ;;  %p253_p5 = scmp.lt.s32.totalorder %s247_s23, %s247_s23 }
   0xd   :  { %p254_p6 = por %p253_p5, %p252_p4 }
   0xf   :  { %p255_p7 = pnand %p254_p6, %p248_p3 }
  0x11   :  { %258 = shalt.err (!%p255_p7)
}
  0x12   :  { %20 = dma.hbm_to_vmem [thread:$0]  %s383_s0, 128, %s18_s13, [#allocation3]  }
  0x13   :  { %s259_s28 = scalar_lea.hbm %s384_s1, 2048 }
  0x14   :  { %p260_p8 = scmp.ne.s32.totalorder %s384_s1, %s259_s28  ;;  %p263_p9 = scmp.lt.u32.totalorder %s259_s28, %s384_s1 }
  0x16   :  { %p265_p10 = pnand %p263_p9, %p260_p8 }
  0x18   :  { %268 = shalt.err (!%p265_p10)
}
  0x19   :  { %s269_s6 = scalar_lea.vmem %s337_s15, 2048  ;;  %p274_p12 = scmp.lt.s32.totalorder %s337_s15, %s337_s15 }
  0x1a   :  { %p270_p11 = scmp.ne.s32.totalorder %s337_s15, %s269_s6  ;;  %p275_p13 = scmp.lt.s32.totalorder %s269_s6, %s269_s6 }
  0x1c   :  { %p276_p0 = por %p275_p13, %p274_p12 }
  0x1e   :  { %p277_p1 = pnand %p276_p0, %p270_p11 }
  0x20   :  { %280 = shalt.err (!%p277_p1)
}
  0x21   :  { %s311_s0 = smov 128   ;;  %s312_s7 = smov 8  }
  0x22   :  { %32 = dma.hbm_to_vmem [thread:$0]  %s384_s1, 2048, %s337_s15, [#allocation6], %s311_s0, %s311_s0, %s312_s7  }
  0x23   :  { %303 = dma.done.wait [#allocation3], 128  }
  0x24   :  { %304 = vsyncadd [#allocation3], 4294967168 }
  0x25   :  { %305 = dma.done.wait [#allocation6], 2048  }
  0x26   :  { %306 = vsyncadd [#allocation6], 4294965248  ;;  %v313_v0 = vmov 0.0|0.0   ;;  %vm314_vm0 = vmmov 0   ;;  %v315_v1 = vmov 0.0   ;;  %v42_v2 = vld [vmem:[#allocation5] sm:$0xff] }
  0x27   :  { %205 = vmatprep.subr.bf16.mxu0 %v313_v0  ;;  %202 = vmatprep.mubr.msk.f32.mxu0 %vm314_vm0, %v315_v1  ;;  %v43_v3 = vld [vmem:[#allocation5 + $0x8] sm:$0xff]  ;;  %v44_v4 = vld [vmem:[#allocation5 + $0x10] sm:$0xff]  ;;  %v45_v6 = vld [vmem:[#allocation5 + $0x18] sm:$0xff]  ;;  %s316_s11 = smov [#allocation7]  }
  0x28   :  { %v206_v5 = vpack.c.bf16 %v43_v3, %v42_v2  ;;  %v209_v7 = vpack.c.bf16 %v45_v6, %v44_v4  ;;  %v46_v8 = vld [vmem:[#allocation5 + $0x20] sm:$0xff]  ;;  %v47_v9 = vld [vmem:[#allocation5 + $0x28] sm:$0xff]  ;;  %v48_v11 = vld [vmem:[#allocation5 + $0x30] sm:$0xff]  ;;  %s142_s12 = sshll.u32 %s316_s11, 4  ;;  %s143_s12 = int_to_ptr.vmem [resolvable:$true] %s142_s12 }
  0x29   :  { %v212_v10 = vpack.c.bf16 %v47_v9, %v46_v8  ;;  %v49_v12 = vld [vmem:[#allocation5 + $0x38] sm:$0xff]  ;;  %v50_v14 = vld [vmem:[#allocation5 + $0x40] sm:$0xff]  ;;  %v51_v15 = vld [vmem:[#allocation5 + $0x48] sm:$0xff]  ;;  %s281_s13 = scalar_lea.vmem %s143_s12, 128  ;;  %p286_p3 = scmp.lt.s32.totalorder %s143_s12, %s143_s12 }
  0x2a   :  { %207 = vmatpush3.bf16.msra.mxu0 %v206_v5  ;;  %v215_v13 = vpack.c.bf16 %v49_v12, %v48_v11  ;;  %v218_v16 = vpack.c.bf16 %v51_v15, %v50_v14  ;;  %v52_v17 = vld [vmem:[#allocation5 + $0x50] sm:$0xff]  ;;  %v53_v18 = vld [vmem:[#allocation5 + $0x58] sm:$0xff]  ;;  %v54_v20 = vld [vmem:[#allocation5 + $0x60] sm:$0xff]  ;;  %p282_p2 = scmp.ne.s32.totalorder %s143_s12, %s281_s13  ;;  %p287_p4 = scmp.lt.s32.totalorder %s281_s13, %s281_s13 }
  0x2b   :  { %208 = vmatprep.subr.bf16.mxu0 %v313_v0  ;;  %v221_v19 = vpack.c.bf16 %v53_v18, %v52_v17  ;;  %v55_v21 = vld [vmem:[#allocation5 + $0x68] sm:$0xff]  ;;  %v56_v23 = vld [vmem:[#allocation5 + $0x70] sm:$0xff]  ;;  %v57_v24 = vld [vmem:[#allocation5 + $0x78] sm:$0xff] }
  0x2c   :  { %v224_v22 = vpack.c.bf16 %v55_v21, %v54_v20  ;;  %v227_v25 = vpack.c.bf16 %v57_v24, %v56_v23  ;;  %v41_v26 = vld [vmem:[#allocation2] sm:$0xff]  ;;  %p288_p5 = por %p287_p4, %p286_p3 }
  0x2d   :  { %v152_v27 = vld [vmem:[%s385_s2] ss:$0 sm:$0xff] }
  0x2e   :  { %210 = vmatpush3.bf16.msra.mxu0 %v209_v7  ;;  %p289_p6 = pnand %p288_p5, %p282_p2 }
  0x2f   :  { %211 = vmatprep.subr.bf16.mxu0 %v313_v0 }
  0x32   :  { %213 = vmatpush3.bf16.msra.mxu0 %v212_v10 }
  0x33   :  { %214 = vmatprep.subr.bf16.mxu0 %v313_v0 }
  0x36   :  { %216 = vmatpush3.bf16.msra.mxu0 %v215_v13 }
  0x37   :  { %217 = vmatprep.subr.bf16.mxu0 %v313_v0 }
  0x3a   :  { %219 = vmatpush3.bf16.msra.mxu0 %v218_v16 }
  0x3b   :  { %220 = vmatprep.subr.bf16.mxu0 %v313_v0 }
  0x3e   :  { %222 = vmatpush3.bf16.msra.mxu0 %v221_v19 }
  0x3f   :  { %223 = vmatprep.subr.bf16.mxu0 %v313_v0 }
  0x42   :  { %225 = vmatpush3.bf16.msra.mxu0 %v224_v22 }
  0x43   :  { %226 = vmatprep.subr.bf16.mxu0 %v313_v0 }
  0x46   :  { %228 = vmatpush3.bf16.msra.mxu0 %v227_v25 }
  0x49   :  { %203 = vmatmul.mubr.f32.vlgmr.msra.gmra.mrb[0].mxu0 %v41_v26 }
 0x11c   :  { %v131_v28 = vpop.f32.mrb[0].mxu0 }
 0x11d   :  { %v132_v29 = vadd.f32 %v152_v27, %v131_v28  ;;  %v204_v30 = vpop.f32.mrb[1].mxu0 }
 0x11f   :  { %135 = vst [vmem:[#allocation7] sm:$0xff] %v132_v29 }
 0x120   :  { %292 = shalt.err (!%p289_p6)
}
 0x121   :  { %s293_s16 = scalar_lea.hbm %s386_s3, 128 }
 0x122   :  { %p294_p7 = scmp.ne.s32.totalorder %s386_s3, %s293_s16  ;;  %p297_p8 = scmp.lt.u32.totalorder %s293_s16, %s386_s3 }
 0x124   :  { %p299_p9 = pnand %p297_p8, %p294_p7 }
 0x126   :  { %302 = shalt.err (!%p299_p9)
}
 0x127   :  { %145 = dma.vmem_to_hbm [thread:$0]  %s143_s12, 128, %s386_s3, [#allocation4]  }
 0x128   :  { %307 = dma.done.wait [#allocation4], 128  }
 0x129   :  { %308 = vsyncadd [#allocation4], 4294967168 }
 0x12a   :  { %149 = vsyncpa [#allocation3], 1 }
 0x12b   :  { %150 = vsyncpa [#allocation6], 1 }
 0x12c   :  { %151 = vsyncpa [#allocation4], 1 }

</bundles_post_ra>
